<compile_context>
chip_gen: v7x
topology: tpu7x:2x2x1
jax: 0.10.0
libtpu: 0.0.40
codegen_flags: <defaults>
</compile_context>

<pallas_src>
import jax
import jax.numpy as jnp
from jax.experimental import pallas as pl
from jax.experimental.pallas import tpu as pltpu

# ---------------- model hyper-parameters (small, consistent with the module) --
B = 2            # batch
C_IN = 4         # in_channels
H = W = 16       # obs spatial dims
C_OUT = 8        # out_channels (single conv layer)
KH = KW = 3      # kernel_sizes
STRIDE = 2       # strides
PAD = 1          # padding
HO = WO = (H + 2 * PAD - KH) // STRIDE + 1        # 8
P = HO * WO                                       # 64 spatial positions per image
KPATCH = C_IN * KH * KW                           # 36 (im2col contraction dim)
FLAT = C_OUT * P                                  # 512 (fe_flatten width, NCHW order)
FE_OUT = 32      # features_out
ACT_DIM = 3      # act_dim
H_C = 32         # hidden_sizes (critic head)
CAT_W = 40       # padded width of cat([features, act])  (35 -> 40)

# packed bf16 parameter slab: every block 16-row aligned and starting at lane 0.
R_W1 = 0                       # [FLAT, CAT_W]   fe_fc_hidden_1 weight (cols 32:40 zero)
R_WC = FLAT                    # [C_OUT, KPATCH] conv weight (im2col, (kh,kw,ci) order)
R_BC = R_WC + 16               # [C_OUT, 128]    conv bias, pre-broadcast over lanes
R_WCH = R_BC + 16              # [CAT_W, H_C]    critic_hidden_1 weight (rows 35:40 zero)
R_VEC = R_WCH + 48             # small row-vectors, one per row, lane 0:
R_B1 = R_VEC + 0               #   [1, CAT_W] fe_fc_hidden_1 bias (cols 32:40 zero)
R_BCH = R_VEC + 1              #   [1, H_C]   critic_hidden_1 bias
R_WCO = R_VEC + 2              #   [1, H_C]   critic_output weight (as a row)
R_BCO = R_VEC + 3              #   [1, 1]     critic_output bias
SLAB_ROWS = R_VEC + 16         # 608


# ---------------- fused Pallas kernel -----------------------------------------
def fused_critic_kernel(patches_ref, act_ref, slab_ref, o_ref, flat_sc):
    """conv(+ReLU) -> NCHW flatten (VMEM bounce) -> FC1(+ReLU) -> critic head -> q."""
    f32 = jnp.float32

    # ---- conv as ONE lane-dense matmul: [C_OUT, KPATCH] @ [KPATCH, B*P] -------
    wc = slab_ref[R_WC:R_WC + C_OUT, 0:KPATCH]                        # [8, 36]  bf16
    conv = jnp.dot(wc, patches_ref[...], preferred_element_type=f32)  # [8, 128] f32
    bc = slab_ref[R_BC:R_BC + C_OUT, :].astype(f32)                   # [8, 128]
    a = jnp.maximum(conv + bc, 0.0)                                   # conv + ReLU

    # ---- NCHW flatten: bounce the conv tile through a (B, FLAT) VMEM scratch --
    # `a` has rows = co, lanes = b*P + p;  flat[b, co*P + p] = a[co, b*P + p].
    for b in range(B):
        for co in range(C_OUT):
            flat_sc[b:b + 1, co * P:(co + 1) * P] = a[co:co + 1, b * P:(b + 1) * P]
    conv_flat = flat_sc[...].astype(jnp.bfloat16)                     # [B, 512] lane-dense

    # ---- fe_fc_hidden_1 as ONE matmul [B, 512] @ [512, 40] (+bias, ReLU) ------
    w1 = slab_ref[R_W1:R_W1 + FLAT, 0:CAT_W]                          # [512, 40] bf16
    b1 = slab_ref[R_B1:R_B1 + 1, 0:CAT_W].astype(f32)                 # [1, 40]
    z = jnp.dot(conv_flat, w1, preferred_element_type=f32) + b1       # [B, 40]
    feat = jnp.maximum(z, 0.0)                                        # cols 32:40 stay 0

    # ---- cat([features, act]) without a concat: act arrives pre-padded --------
    cat = feat + act_ref[...]                                         # [B, 40] f32

    # ---- critic_hidden_1 as ONE matmul on the padded cat tile (+ReLU) ---------
    wch = slab_ref[R_WCH:R_WCH + CAT_W, 0:H_C]                        # [40, 32] bf16
    bch = slab_ref[R_BCH:R_BCH + 1, 0:H_C].astype(f32)                # [1, 32]
    hc = jnp.maximum(jnp.dot(cat.astype(jnp.bfloat16), wch,
                             preferred_element_type=f32) + bch, 0.0)  # [B, 32]

    # ---- critic_output as VPU multiply + lane reduction (no tiny MXU matmul) --
    wco = slab_ref[R_WCO:R_WCO + 1, 0:H_C].astype(f32)                # [1, 32]
    bco = slab_ref[R_BCO:R_BCO + 1, 0:1].astype(f32)                  # [1, 1]
    q = jnp.sum(hc * wco, axis=-1, keepdims=True) + bco               # [B, 1]
    o_ref[...] = jnp.broadcast_to(q, (B, 128))                        # lane-dense store


# ---------------- wrapper: lane-folded im2col + single pallas_call -------------
def _im2col_lanefold(obs):
    """pad + 9 strided taps, batch folded into lanes: [KPATCH, B*P] in bf16."""
    xp = jnp.pad(obs, ((0, 0), (0, 0), (PAD, PAD), (PAD, PAD)))
    taps = []
    for i in range(KH):
        for j in range(KW):
            taps.append(xp[:, :, i:i + STRIDE * HO:STRIDE, j:j + STRIDE * WO:STRIDE])
    t = jnp.stack(taps, axis=0)            # [9, B, C_IN, HO, WO]
    t = t.transpose(0, 2, 1, 3, 4)         # [9, C_IN, B, HO, WO]   K = (kh, kw, ci)
    return t.reshape(KPATCH, B * P).astype(jnp.bfloat16)


def cnn_critic_forward(obs, act, slab):
    """Returns q like CNNCritic.forward(obs, act). obs: [B,C,H,W], act: [B,ACT_DIM]."""
    assert obs.shape == (B, C_IN, H, W), obs.shape
    assert act.shape == (B, ACT_DIM), act.shape
    patches = _im2col_lanefold(obs)                                   # [36, 128] bf16
    act_pad = jnp.zeros((B, CAT_W), jnp.float32)
    act_pad = act_pad.at[:, FE_OUT:FE_OUT + ACT_DIM].set(act)         # [B, 40]
    flops = 2 * (C_OUT * KPATCH * B * P + B * FLAT * CAT_W + B * CAT_W * H_C + B * H_C)
    bytes_accessed = 2 * (patches.size + slab.size) + 4 * (act_pad.size + B * 128)
    out = pl.pallas_call(
        fused_critic_kernel,
        out_shape=jax.ShapeDtypeStruct((B, 128), jnp.float32),
        in_specs=[pl.BlockSpec(memory_space=pltpu.MemorySpace.VMEM)] * 3,
        out_specs=pl.BlockSpec(memory_space=pltpu.MemorySpace.VMEM),
        scratch_shapes=[pltpu.VMEM((B, FLAT), jnp.float32)],
        cost_estimate=pl.CostEstimate(flops=flops, transcendentals=0,
                                      bytes_accessed=bytes_accessed),
    )(patches, act_pad, slab)
    return out[:, :1]                                                 # q: [B, 1]


# ---------------- parameters: init + one-time packing --------------------------
def init_params(key):
    """Deterministic synthetic init (PyTorch-style [out, in] Linear weights)."""
    ks = jax.random.split(key, 8)
    r = lambda k, s, sc=0.1: sc * jax.random.normal(k, s, dtype=jnp.float32)
    return {
        "w_conv": r(ks[0], (C_OUT, C_IN, KH, KW)),    # fe_conv_1
        "b_conv": r(ks[1], (C_OUT,)),
        "w_fc1":  r(ks[2], (FE_OUT, FLAT)),           # fe_fc_hidden_1
        "b_fc1":  r(ks[3], (FE_OUT,)),
        "w_ch":   r(ks[4], (H_C, FE_OUT + ACT_DIM)),  # critic_hidden_1
        "b_ch":   r(ks[5], (H_C,)),
        "w_co":   r(ks[6], (1, H_C)),                 # critic_output
        "b_co":   r(ks[7], (1,)),
    }


def pack_params(p):
    """One-time weight prep: fold the NCHW flatten into a 2-D w_fc1, pad the cat
    weight, and pack everything into ONE bf16, lane-0 / 16-row-aligned slab."""
    wc = p["w_conv"].transpose(0, 2, 3, 1).reshape(C_OUT, KPATCH)     # K = (kh, kw, ci)
    w1flat = p["w_fc1"].T                                             # [FLAT, 32], rows = co*P+p
    wch = p["w_ch"].T                                                 # [35, 32]
    slab = jnp.zeros((SLAB_ROWS, 128), jnp.float32)
    slab = slab.at[R_W1:R_W1 + FLAT, 0:FE_OUT].set(w1flat)
    slab = slab.at[R_WC:R_WC + C_OUT, 0:KPATCH].set(wc)
    slab = slab.at[R_BC:R_BC + C_OUT, :].set(
        jnp.broadcast_to(p["b_conv"][:, None], (C_OUT, 128)))
    slab = slab.at[R_WCH:R_WCH + FE_OUT + ACT_DIM, 0:H_C].set(wch)
    slab = slab.at[R_B1, 0:FE_OUT].set(p["b_fc1"])
    slab = slab.at[R_BCH, 0:H_C].set(p["b_ch"])
    slab = slab.at[R_WCO, 0:H_C].set(p["w_co"][0])
    slab = slab.at[R_BCO, 0].set(p["b_co"][0])
    return slab.astype(jnp.bfloat16)


# ---------------- pure-JAX reference (mirrors the PyTorch forward, f32) --------
def reference_forward(obs, act, p):
    y = jax.lax.conv_general_dilated(
        obs, p["w_conv"], (STRIDE, STRIDE), ((PAD, PAD), (PAD, PAD)),
        dimension_numbers=("NCHW", "OIHW", "NCHW"))
    y = jnp.maximum(y + p["b_conv"][None, :, None, None], 0.0)
    flat = y.reshape(obs.shape[0], -1)                                # NCHW flatten
    feat = jnp.maximum(flat @ p["w_fc1"].T + p["b_fc1"], 0.0)
    cat = jnp.concatenate([feat, act], axis=1)
    hc = jnp.maximum(cat @ p["w_ch"].T + p["b_ch"], 0.0)
    return hc @ p["w_co"].T + p["b_co"]


if __name__ == "__main__":
    key = jax.random.PRNGKey(0)
    k_obs, k_act, k_par = jax.random.split(key, 3)
    obs = jax.random.normal(k_obs, (B, C_IN, H, W), dtype=jnp.float32)
    act = jax.random.normal(k_act, (B, ACT_DIM), dtype=jnp.float32)
    params = init_params(k_par)
    slab = pack_params(params)            # one-time weight prep, outside the hot path

    fwd = jax.jit(lambda o, a: cnn_critic_forward(o, a, slab))
    q = jax.block_until_ready(fwd(obs, act))

    q_ref = reference_forward(obs, act, params)
    assert q.shape == (B, 1)
    # bf16 MXU inputs (f32 accumulation) -> compare with bf16-appropriate tolerance.
    assert jnp.allclose(q, q_ref, rtol=5e-2, atol=2e-2), (q, q_ref)
    print("KERNEL_OK")
</pallas_src>

<mosaic_0001>
module attributes {stable_mosaic.version = 11 : i64} {
  func.func @fused_critic_kernel(%arg0: memref<36x128xbf16, #tpu.memory_space<vmem>>, %arg1: memref<2x40xf32, #tpu.memory_space<vmem>>, %arg2: memref<608x128xbf16, #tpu.memory_space<vmem>>, %arg3: memref<2x128xf32, #tpu.memory_space<vmem>>, %arg4: memref<2x512xf32, #tpu.memory_space<vmem>>) attributes {dimension_semantics = [], scalar_prefetch = 0 : i64, scratch_operands = 1 : i64, tpu.core_type = #tpu.core_type<tc>} {
    %c512 = arith.constant 512 : index
    %c0 = arith.constant 0 : index
    %0 = vector.load %arg2[%c512, %c0] : memref<608x128xbf16, #tpu.memory_space<vmem>>, vector<8x36xbf16>
    %c0_0 = arith.constant 0 : index
    %c0_1 = arith.constant 0 : index
    %1 = vector.load %arg0[%c0_0, %c0_1] : memref<36x128xbf16, #tpu.memory_space<vmem>>, vector<36x128xbf16>
    %cst = arith.constant dense<0.000000e+00> : vector<8x128xf32>
    %2 = tpu.matmul %0, %1, %cst {dimension_numbers = #tpu.dot_dimension_numbers<[1], [0], [0], [1], [0, 0, 1, 1], [], []>} : vector<8x36xbf16>, vector<36x128xbf16>, vector<8x128xf32> -> vector<8x128xf32>
    %c528 = arith.constant 528 : index
    %c0_2 = arith.constant 0 : index
    %3 = vector.load %arg2[%c528, %c0_2] : memref<608x128xbf16, #tpu.memory_space<vmem>>, vector<8x128xbf16>
    %4 = arith.extf %3 : vector<8x128xbf16> to vector<8x128xf32>
    %5 = arith.addf %2, %4 : vector<8x128xf32>
    %cst_3 = arith.constant 0.000000e+00 : f32
    %6 = vector.broadcast %cst_3 : f32 to vector<8x128xf32>
    %7 = arith.maximumf %5, %6 : vector<8x128xf32>
    %8 = vector.extract_strided_slice %7 {offsets = [0, 0], sizes = [1, 64], strides = [1, 1]} : vector<8x128xf32> to vector<1x64xf32>
    %c0_4 = arith.constant 0 : index
    %c0_5 = arith.constant 0 : index
    %9 = vector.load %arg4[%c0_4, %c0_5] : memref<2x512xf32, #tpu.memory_space<vmem>>, vector<1x64xf32>
    tpu.vector_store %arg4[%c0_4, %c0_5], %8 {strides = array<i32>} : memref<2x512xf32, #tpu.memory_space<vmem>>, vector<1x64xf32>,
    %10 = vector.extract_strided_slice %7 {offsets = [1, 0], sizes = [1, 64], strides = [1, 1]} : vector<8x128xf32> to vector<1x64xf32>
    %c0_6 = arith.constant 0 : index
    %c64 = arith.constant 64 : index
    %11 = vector.load %arg4[%c0_6, %c64] : memref<2x512xf32, #tpu.memory_space<vmem>>, vector<1x64xf32>
    tpu.vector_store %arg4[%c0_6, %c64], %10 {strides = array<i32>} : memref<2x512xf32, #tpu.memory_space<vmem>>, vector<1x64xf32>,
    %12 = vector.extract_strided_slice %7 {offsets = [2, 0], sizes = [1, 64], strides = [1, 1]} : vector<8x128xf32> to vector<1x64xf32>
    %c0_7 = arith.constant 0 : index
    %c128 = arith.constant 128 : index
    %13 = vector.load %arg4[%c0_7, %c128] : memref<2x512xf32, #tpu.memory_space<vmem>>, vector<1x64xf32>
    tpu.vector_store %arg4[%c0_7, %c128], %12 {strides = array<i32>} : memref<2x512xf32, #tpu.memory_space<vmem>>, vector<1x64xf32>,
    %14 = vector.extract_strided_slice %7 {offsets = [3, 0], sizes = [1, 64], strides = [1, 1]} : vector<8x128xf32> to vector<1x64xf32>
    %c0_8 = arith.constant 0 : index
    %c192 = arith.constant 192 : index
    %15 = vector.load %arg4[%c0_8, %c192] : memref<2x512xf32, #tpu.memory_space<vmem>>, vector<1x64xf32>
    tpu.vector_store %arg4[%c0_8, %c192], %14 {strides = array<i32>} : memref<2x512xf32, #tpu.memory_space<vmem>>, vector<1x64xf32>,
    %16 = vector.extract_strided_slice %7 {offsets = [4, 0], sizes = [1, 64], strides = [1, 1]} : vector<8x128xf32> to vector<1x64xf32>
    %c0_9 = arith.constant 0 : index
    %c256 = arith.constant 256 : index
    %17 = vector.load %arg4[%c0_9, %c256] : memref<2x512xf32, #tpu.memory_space<vmem>>, vector<1x64xf32>
    tpu.vector_store %arg4[%c0_9, %c256], %16 {strides = array<i32>} : memref<2x512xf32, #tpu.memory_space<vmem>>, vector<1x64xf32>,
    %18 = vector.extract_strided_slice %7 {offsets = [5, 0], sizes = [1, 64], strides = [1, 1]} : vector<8x128xf32> to vector<1x64xf32>
    %c0_10 = arith.constant 0 : index
    %c320 = arith.constant 320 : index
    %19 = vector.load %arg4[%c0_10, %c320] : memref<2x512xf32, #tpu.memory_space<vmem>>, vector<1x64xf32>
    tpu.vector_store %arg4[%c0_10, %c320], %18 {strides = array<i32>} : memref<2x512xf32, #tpu.memory_space<vmem>>, vector<1x64xf32>,
    %20 = vector.extract_strided_slice %7 {offsets = [6, 0], sizes = [1, 64], strides = [1, 1]} : vector<8x128xf32> to vector<1x64xf32>
    %c0_11 = arith.constant 0 : index
    %c384 = arith.constant 384 : index
    %21 = vector.load %arg4[%c0_11, %c384] : memref<2x512xf32, #tpu.memory_space<vmem>>, vector<1x64xf32>
    tpu.vector_store %arg4[%c0_11, %c384], %20 {strides = array<i32>} : memref<2x512xf32, #tpu.memory_space<vmem>>, vector<1x64xf32>,
    %22 = vector.extract_strided_slice %7 {offsets = [7, 0], sizes = [1, 64], strides = [1, 1]} : vector<8x128xf32> to vector<1x64xf32>
    %c0_12 = arith.constant 0 : index
    %c448 = arith.constant 448 : index
    %23 = vector.load %arg4[%c0_12, %c448] : memref<2x512xf32, #tpu.memory_space<vmem>>, vector<1x64xf32>
    tpu.vector_store %arg4[%c0_12, %c448], %22 {strides = array<i32>} : memref<2x512xf32, #tpu.memory_space<vmem>>, vector<1x64xf32>,
    %24 = vector.extract_strided_slice %7 {offsets = [0, 64], sizes = [1, 64], strides = [1, 1]} : vector<8x128xf32> to vector<1x64xf32>
    %c1 = arith.constant 1 : index
    %c0_13 = arith.constant 0 : index
    %25 = vector.load %arg4[%c1, %c0_13] : memref<2x512xf32, #tpu.memory_space<vmem>>, vector<1x64xf32>
    tpu.vector_store %arg4[%c1, %c0_13], %24 {strides = array<i32>} : memref<2x512xf32, #tpu.memory_space<vmem>>, vector<1x64xf32>,
    %26 = vector.extract_strided_slice %7 {offsets = [1, 64], sizes = [1, 64], strides = [1, 1]} : vector<8x128xf32> to vector<1x64xf32>
    %c1_14 = arith.constant 1 : index
    %c64_15 = arith.constant 64 : index
    %27 = vector.load %arg4[%c1_14, %c64_15] : memref<2x512xf32, #tpu.memory_space<vmem>>, vector<1x64xf32>
    tpu.vector_store %arg4[%c1_14, %c64_15], %26 {strides = array<i32>} : memref<2x512xf32, #tpu.memory_space<vmem>>, vector<1x64xf32>,
    %28 = vector.extract_strided_slice %7 {offsets = [2, 64], sizes = [1, 64], strides = [1, 1]} : vector<8x128xf32> to vector<1x64xf32>
    %c1_16 = arith.constant 1 : index
    %c128_17 = arith.constant 128 : index
    %29 = vector.load %arg4[%c1_16, %c128_17] : memref<2x512xf32, #tpu.memory_space<vmem>>, vector<1x64xf32>
    tpu.vector_store %arg4[%c1_16, %c128_17], %28 {strides = array<i32>} : memref<2x512xf32, #tpu.memory_space<vmem>>, vector<1x64xf32>,
    %30 = vector.extract_strided_slice %7 {offsets = [3, 64], sizes = [1, 64], strides = [1, 1]} : vector<8x128xf32> to vector<1x64xf32>
    %c1_18 = arith.constant 1 : index
    %c192_19 = arith.constant 192 : index
    %31 = vector.load %arg4[%c1_18, %c192_19] : memref<2x512xf32, #tpu.memory_space<vmem>>, vector<1x64xf32>
    tpu.vector_store %arg4[%c1_18, %c192_19], %30 {strides = array<i32>} : memref<2x512xf32, #tpu.memory_space<vmem>>, vector<1x64xf32>,
    %32 = vector.extract_strided_slice %7 {offsets = [4, 64], sizes = [1, 64], strides = [1, 1]} : vector<8x128xf32> to vector<1x64xf32>
    %c1_20 = arith.constant 1 : index
    %c256_21 = arith.constant 256 : index
    %33 = vector.load %arg4[%c1_20, %c256_21] : memref<2x512xf32, #tpu.memory_space<vmem>>, vector<1x64xf32>
    tpu.vector_store %arg4[%c1_20, %c256_21], %32 {strides = array<i32>} : memref<2x512xf32, #tpu.memory_space<vmem>>, vector<1x64xf32>,
    %34 = vector.extract_strided_slice %7 {offsets = [5, 64], sizes = [1, 64], strides = [1, 1]} : vector<8x128xf32> to vector<1x64xf32>
    %c1_22 = arith.constant 1 : index
    %c320_23 = arith.constant 320 : index
    %35 = vector.load %arg4[%c1_22, %c320_23] : memref<2x512xf32, #tpu.memory_space<vmem>>, vector<1x64xf32>
    tpu.vector_store %arg4[%c1_22, %c320_23], %34 {strides = array<i32>} : memref<2x512xf32, #tpu.memory_space<vmem>>, vector<1x64xf32>,
    %36 = vector.extract_strided_slice %7 {offsets = [6, 64], sizes = [1, 64], strides = [1, 1]} : vector<8x128xf32> to vector<1x64xf32>
    %c1_24 = arith.constant 1 : index
    %c384_25 = arith.constant 384 : index
    %37 = vector.load %arg4[%c1_24, %c384_25] : memref<2x512xf32, #tpu.memory_space<vmem>>, vector<1x64xf32>
    tpu.vector_store %arg4[%c1_24, %c384_25], %36 {strides = array<i32>} : memref<2x512xf32, #tpu.memory_space<vmem>>, vector<1x64xf32>,
    %38 = vector.extract_strided_slice %7 {offsets = [7, 64], sizes = [1, 64], strides = [1, 1]} : vector<8x128xf32> to vector<1x64xf32>
    %c1_26 = arith.constant 1 : index
    %c448_27 = arith.constant 448 : index
    %39 = vector.load %arg4[%c1_26, %c448_27] : memref<2x512xf32, #tpu.memory_space<vmem>>, vector<1x64xf32>
    tpu.vector_store %arg4[%c1_26, %c448_27], %38 {strides = array<i32>} : memref<2x512xf32, #tpu.memory_space<vmem>>, vector<1x64xf32>,
    %c0_28 = arith.constant 0 : index
    %c0_29 = arith.constant 0 : index
    %40 = vector.load %arg4[%c0_28, %c0_29] : memref<2x512xf32, #tpu.memory_space<vmem>>, vector<2x512xf32>
    %41 = arith.truncf %40 : vector<2x512xf32> to vector<2x512xbf16>
    %c0_30 = arith.constant 0 : index
    %c0_31 = arith.constant 0 : index
    %42 = vector.load %arg2[%c0_30, %c0_31] : memref<608x128xbf16, #tpu.memory_space<vmem>>, vector<512x40xbf16>
    %c592 = arith.constant 592 : index
    %c0_32 = arith.constant 0 : index
    %43 = vector.load %arg2[%c592, %c0_32] : memref<608x128xbf16, #tpu.memory_space<vmem>>, vector<1x40xbf16>
    %44 = arith.extf %43 : vector<1x40xbf16> to vector<1x40xf32>
    %cst_33 = arith.constant dense<0.000000e+00> : vector<2x40xf32>
    %45 = tpu.matmul %41, %42, %cst_33 {dimension_numbers = #tpu.dot_dimension_numbers<[1], [0], [0], [1], [0, 0, 1, 1], [], []>} : vector<2x512xbf16>, vector<512x40xbf16>, vector<2x40xf32> -> vector<2x40xf32>
    %46 = vector.broadcast %44 : vector<1x40xf32> to vector<2x40xf32>
    %47 = arith.addf %45, %46 : vector<2x40xf32>
    %cst_34 = arith.constant 0.000000e+00 : f32
    %48 = vector.broadcast %cst_34 : f32 to vector<2x40xf32>
    %49 = arith.maximumf %47, %48 : vector<2x40xf32>
    %c0_35 = arith.constant 0 : index
    %c0_36 = arith.constant 0 : index
    %50 = vector.load %arg1[%c0_35, %c0_36] : memref<2x40xf32, #tpu.memory_space<vmem>>, vector<2x40xf32>
    %51 = arith.addf %49, %50 : vector<2x40xf32>
    %c544 = arith.constant 544 : index
    %c0_37 = arith.constant 0 : index
    %52 = vector.load %arg2[%c544, %c0_37] : memref<608x128xbf16, #tpu.memory_space<vmem>>, vector<40x32xbf16>
    %c593 = arith.constant 593 : index
    %c0_38 = arith.constant 0 : index
    %53 = vector.load %arg2[%c593, %c0_38] : memref<608x128xbf16, #tpu.memory_space<vmem>>, vector<1x32xbf16>
    %54 = arith.extf %53 : vector<1x32xbf16> to vector<1x32xf32>
    %55 = arith.truncf %51 : vector<2x40xf32> to vector<2x40xbf16>
    %cst_39 = arith.constant dense<0.000000e+00> : vector<2x32xf32>
    %56 = tpu.matmul %55, %52, %cst_39 {dimension_numbers = #tpu.dot_dimension_numbers<[1], [0], [0], [1], [0, 0, 1, 1], [], []>} : vector<2x40xbf16>, vector<40x32xbf16>, vector<2x32xf32> -> vector<2x32xf32>
    %57 = vector.broadcast %54 : vector<1x32xf32> to vector<2x32xf32>
    %58 = arith.addf %56, %57 : vector<2x32xf32>
    %cst_40 = arith.constant 0.000000e+00 : f32
    %59 = vector.broadcast %cst_40 : f32 to vector<2x32xf32>
    %60 = arith.maximumf %58, %59 : vector<2x32xf32>
    %c594 = arith.constant 594 : index
    %c0_41 = arith.constant 0 : index
    %61 = vector.load %arg2[%c594, %c0_41] : memref<608x128xbf16, #tpu.memory_space<vmem>>, vector<1x32xbf16>
    %62 = arith.extf %61 : vector<1x32xbf16> to vector<1x32xf32>
    %c595 = arith.constant 595 : index
    %c0_42 = arith.constant 0 : index
    %63 = vector.load %arg2[%c595, %c0_42] : memref<608x128xbf16, #tpu.memory_space<vmem>>, vector<1x1xbf16>
    %64 = arith.extf %63 : vector<1x1xbf16> to vector<1x1xf32>
    %65 = vector.broadcast %62 : vector<1x32xf32> to vector<2x32xf32>
    %66 = arith.mulf %60, %65 : vector<2x32xf32>
    %cst_43 = arith.constant dense<0.000000e+00> : vector<2xf32>
    %67 = vector.multi_reduction <add>, %66, %cst_43 [1] : vector<2x32xf32> to vector<2xf32>
    %68 = vector.shape_cast %67 : vector<2xf32> to vector<2x1xf32>
    %69 = vector.broadcast %64 : vector<1x1xf32> to vector<2x1xf32>
    %70 = arith.addf %68, %69 : vector<2x1xf32>
    %71 = vector.shape_cast %70 : vector<2x1xf32> to vector<2x1xf32>
    %72 = vector.broadcast %71 : vector<2x1xf32> to vector<2x128xf32>
    %c0_44 = arith.constant 0 : index
    %c0_45 = arith.constant 0 : index
    %73 = vector.load %arg3[%c0_44, %c0_45] : memref<2x128xf32, #tpu.memory_space<vmem>>, vector<2x128xf32>
    tpu.vector_store %arg3[%c0_44, %c0_45], %72 {strides = array<i32>} : memref<2x128xf32, #tpu.memory_space<vmem>>, vector<2x128xf32>,
    return
  }
}

</mosaic_0001>

<bundles_post_ra>
// kernel: _lambda_.1
= control target key start
LH: loop header
LB: loop body
LE: loop exit
PB: predicated region body
PF: predicated region fallthrough
CT: control target
= control target key end

     0   :  { %v792_v0 = vmov 0.0   ;;  %vm793_vm0 = vmmov 0   ;;  %vm42_vm1 = vcmask 1041408   ;;  %vm38_vm2 = vcmask 293888   ;;  %s795_s29 = smov 64   ;;  %s996_s0 = inlined_call_operand.vmem [shape: bf16[36,128], index: 0, kind: input, shape index: {}]   ;;  %s997_s2 = inlined_call_operand.vmem [shape: bf16[608,128], index: 2, kind: input, shape index: {}]   ;;  %s998_s1 = inlined_call_operand.vmem [shape: f32[2,40], index: 1, kind: input, shape index: {}]   ;;  %s999_s3 = inlined_call_operand.vmem [shape: f32[2,128], index: 3, kind: output, shape index: {}]  }
   0x1   :  { %726 = vmatprep.subr.bf16.mxu0 %v792_v0  ;;  %v753_v1 = vld [vmem:[%s996_s0] sm:$0xff]   ;;  %732 = vmatprep.mubr.msk.bf16.mxu0 %vm793_vm0, %v792_v0  ;;  %v754_v2 = vld [vmem:[%s996_s0 + $0x8] sm:$0xff]   ;;  %v755_v3 = vld [vmem:[%s996_s0 + $0x10] ss:$0 sps:$4 sm:$0x33]   ;;  %v93_v12 = vlaneseq  ;;  %vm87_vm3 = vcmask 516096  }
   0x2   :  { %727 = vmatpush3.bf16.msra.mxu0 %v753_v1  ;;  %v44_v4 = vsel %vm42_vm1, %v755_v3, 0  ;;  %v15_v5 = vld [vmem:[%s997_s2 + $0x100] sm:$0xf]  ;;  %v794_v10 = vmov 1983009808   ;;  %v760_v13 = vld [vmem:[%s997_s2 + $0x48] sm:$0xff]  }
   0x3   :  { %728 = vmatprep.subr.bf16.mxu0 %v792_v0  ;;  %v756_v6 = vld [vmem:[%s997_s2 + $0x40] sm:$0xff]   ;;  %v91_v11 = vunpack.c.l.s4 %v794_v10  ;;  %v21_v14 = vld [vmem:[%s997_s2 + $0x108] sm:$0xf]  ;;  %v861_v20 = vshrl.u32 %v93_v12, 7  ;;  %v764_v21 = vld [vmem:[%s997_s2 + $0x50] sm:$0xff]   ;;  %vm102_vm4 = vcmask 1040896  }
   0x4   :  { %v757_v7 = vld [vmem:[%s997_s2] sm:$0xff]   ;;  %678 = vmatprep.subr.bf16.mxu1 %v756_v6  ;;  %v761_v15 = vld [vmem:[%s997_s2 + $0x8] sm:$0xff]   ;;  %v22_v18 = vunpack.c.l.bf16 %v21_v14  ;;  %v765_v22 = vld [vmem:[%s997_s2 + $0x10] sm:$0xff]   ;;  %vm563_vm5 = vcmask 1043456   ;;  %vm559_vm6 = vcmask 326656   ;;  %vm615_vm7 = vcmask 254976  }
   0x5   :  { %v758_v8 = vld [vmem:[%s997_s2 + $0xc0] sm:$0xff]   ;;  %679 = vmatpush3.bf16.msra.mxu1 %v757_v7  ;;  %v762_v16 = vld [vmem:[%s997_s2 + $0xc8] sm:$0xff]   ;;  %v92_v19 = vunpack.c.0.s8 %v91_v11  ;;  %v766_v23 = vld [vmem:[%s997_s2 + $0xd0] sm:$0xff]  }
   0x6   :  { %729 = vmatpush3.bf16.msra.mxu0 %v754_v2  ;;  %v759_v9 = vld [vmem:[%s997_s2 + $0x80] sm:$0xff]   ;;  %680 = vmatprep.subr.bf16.mxu1 %v760_v13  ;;  %v763_v17 = vld [vmem:[%s997_s2 + $0x88] sm:$0xff]   ;;  %v767_v25 = vld [vmem:[%s997_s2 + $0x90] sm:$0xff]  }
   0x7   :  { %730 = vmatprep.subr.bf16.mxu0 %v792_v0  ;;  %v876_v28 = vsub.s32 %v92_v19, %v861_v20  ;;  %v768_v29 = vld [vmem:[%s997_s2 + $0x58] sm:$0xff]   ;;  %v772_v38 = vld [vmem:[%s997_s2 + $0x60] sm:$0xff]   ;;  %v776_v44 = vld [vmem:[%s997_s2 + $0x68] sm:$0xff]  }
   0x8   :  { %v769_v31 = vld [vmem:[%s997_s2 + $0x18] sm:$0xff]   ;;  %v773_v39 = vld [vmem:[%s997_s2 + $0x20] sm:$0xff]   ;;  %v777_v45 = vld [vmem:[%s997_s2 + $0x28] sm:$0xff]  }
   0x9   :  { %681 = vmatpush3.bf16.msra.mxu1 %v761_v15  ;;  %v770_v34 = vld [vmem:[%s997_s2 + $0xd8] sm:$0xff]   ;;  %v774_v42 = vld [vmem:[%s997_s2 + $0xe0] sm:$0xff]   ;;  %v778_v48 = vld [vmem:[%s997_s2 + $0xe8] sm:$0xff]  }
   0xa   :  { %731 = vmatpush3.bf16.msra.mxu0 %v44_v4  ;;  %682 = vmatprep.subr.bf16.mxu1 %v764_v21  ;;  %v771_v35 = vld [vmem:[%s997_s2 + $0x98] sm:$0xff]   ;;  %v775_v43 = vld [vmem:[%s997_s2 + $0xa0] sm:$0xff]   ;;  %v780_v49 = vld [vmem:[%s997_s2 + $0x70] sm:$0xff]  }
   0xb   :  { %700 = vmatprep.subr.bf16.mxu0 %v758_v8  ;;  %v779_v50 = vld [vmem:[%s997_s2 + $0xa8] sm:$0xff]   ;;  %v782_v52 = vld [vmem:[%s997_s2 + $0xf0] sm:$0xff]   ;;  %v784_v56 = vld [vmem:[%s997_s2 + $0x78] sm:$0xff]  }
   0xc   :  { %v781_v53 = vld [vmem:[%s997_s2 + $0x30] sm:$0xff]   ;;  %v786_v60 = vld [vmem:[%s997_s2 + $0xf8] sm:$0xff]  }
   0xd   :  { %733 = vmatmul.mubr.msk.bf16.vlgmr.msra.gmra.mrb[0].mxu0 %vm38_vm2, %v15_v5  ;;  %683 = vmatpush3.bf16.msra.mxu1 %v765_v22  ;;  %v783_v57 = vld [vmem:[%s997_s2 + $0xb0] sm:$0xff]   ;;  %v785_v61 = vld [vmem:[%s997_s2 + $0x38] sm:$0xff]  }
   0xe   :  { %701 = vmatpush3.bf16.msra.mxu0 %v759_v9  ;;  %684 = vmatprep.subr.bf16.mxu1 %v768_v29  ;;  %v788_v1 = vld [vmem:[%s997_s2 + $0xb8] sm:$0xff]   ;;  %v789_v21 = vld [vmem:[%s997_s2 + $0x110] sm:$0xff]  }
   0xf   :  { %702 = vmatprep.subr.bf16.mxu0 %v762_v16  ;;  %v790_v22 = vld [vmem:[%s997_s2 + $0x118] sm:$0xff]  }
  0x11   :  { %685 = vmatpush3.bf16.msra.mxu1 %v769_v31 }
  0x12   :  { %703 = vmatpush3.bf16.msra.mxu0 %v763_v17  ;;  %686 = vmatprep.subr.bf16.mxu1 %v772_v38 }
  0x13   :  { %704 = vmatprep.subr.bf16.mxu0 %v766_v23  ;;  %v791_v23 = vld [vmem:[%s997_s2 + $0x120] ss:$0 sps:$4 sm:$0xff]  }
  0x15   :  { %687 = vmatpush3.bf16.msra.mxu1 %v773_v39 }
  0x16   :  { %705 = vmatpush3.bf16.msra.mxu0 %v767_v25  ;;  %688 = vmatprep.subr.bf16.mxu1 %v776_v44  ;;  %v253_v25 = vld [vmem:[%s997_s2 + $0x128] sm:$0x1]  ;;  %v542_v44 = vsub.s32 1, %v861_v20 }
  0x17   :  { %706 = vmatprep.subr.bf16.mxu0 %v770_v34 }
  0x19   :  { %689 = vmatpush3.bf16.msra.mxu1 %v777_v45  ;;  %v608_v45 = vld [vmem:[%s997_s2 + $0x128] sm:$0x2] }
  0x1a   :  { %707 = vmatpush3.bf16.msra.mxu0 %v771_v35  ;;  %690 = vmatprep.subr.bf16.mxu1 %v780_v49 }
  0x1b   :  { %708 = vmatprep.subr.bf16.mxu0 %v774_v42 }
  0x1d   :  { %691 = vmatpush3.bf16.msra.mxu1 %v781_v53 }
  0x1e   :  { %709 = vmatpush3.bf16.msra.mxu0 %v775_v43  ;;  %692 = vmatprep.subr.bf16.mxu1 %v784_v56 }
  0x1f   :  { %710 = vmatprep.subr.bf16.mxu0 %v778_v48  ;;  %v612_v48 = vsub.s32 2, %v861_v20 }
  0x21   :  { %693 = vmatpush3.bf16.msra.mxu1 %v785_v61 }
  0x22   :  { %711 = vmatpush3.bf16.msra.mxu0 %v779_v50  ;;  %736 = vmatprep.subr.bf16.mxu1 %v792_v0 }
  0x23   :  { %712 = vmatprep.subr.bf16.mxu0 %v782_v52 }
  0x26   :  { %713 = vmatpush3.bf16.msra.mxu0 %v783_v57 }
  0x27   :  { %714 = vmatprep.subr.bf16.mxu0 %v786_v60 }
  0x2a   :  { %715 = vmatpush3.bf16.msra.mxu0 %v788_v1 }
  0xe0   :  { %v80_v24 = vpop.f32.mrb[0].mxu0 }
  0xe1   :  { %v81_v26 = vadd.f32 %v80_v24, %v22_v18  ;;  %v734_v27 = vpop.f32.mrb[1].mxu0  ;;  %v565_v24 = vsel %vm563_vm5, %v791_v23, 0 }
  0xe2   :  { %v83_v30 = vpop.f32.mrb[2].mxu0  ;;  %v257_v27 = vsub.s32 0, %v861_v20 }
  0xe3   :  { %v86_v32 = vmax.f32 %v81_v26, 0.0  ;;  %v735_v33 = vpop.f32.mrb[3].mxu0  ;;  %v254_v26 = vunpack.c.l.bf16 %v253_v25 }
  0xe5   :  { %v113_v36 = vcombine.high %v86_v32, %v86_v32  ;;  %v96_v37 = vrot.slane %v86_v32, %v876_v28  ;;  %88 = vst.msk [vmem:[#allocation2] sm:$0x1] %vm87_vm3, %v86_v32  ;;  %v258_v29 = vrot.slane %v254_v26, %v257_v27 }
  0xe7   :  { %138 = vrot.lane.b32.xlu0 %v96_v37, %s795_s29  ;;  %v120_v40 = vrot.slane %v113_v36, %v876_v28  ;;  %v104_v41 = vcombine.high %v96_v37, %v96_v37  ;;  %v97_v47 = vrot.slane %v96_v37, 7 }
  0xe9   :  { %150 = vrot.lane.b32.xlu1 %v120_v40, %s795_s29  ;;  %v129_v46 = vcombine.high %v120_v40, %v120_v40  ;;  %106 = vst.msk [vmem:[#allocation2 + $0x2] sm:$0x1] %vm87_vm3, %v104_v41  ;;  %122 = vst.msk [vmem:[#allocation2 + $0x4] sm:$0x1] %vm87_vm3, %v120_v40  ;;  %v107_v51 = vrot.slane %v104_v41, 7  ;;  %v98_v54 = vrot.slane %v97_v47, 2  ;;  %v609_v47 = vunpack.c.l.bf16 %v608_v45 }
  0xea   :  { %v123_v55 = vrot.slane %v120_v40, 7  ;;  %v532_v40 = vld [vmem:[%s998_s1] sm:$0x3] }
  0xeb   :  { %144 = vrot.lane.b32.xlu0 %v104_v41, %s795_s29  ;;  %131 = vst.msk [vmem:[#allocation2 + $0x6] sm:$0x1] %vm87_vm3, %v129_v46  ;;  %v108_v58 = vrot.slane %v107_v51, 2  ;;  %v132_v59 = vrot.slane %v129_v46, 7  ;;  %v613_v52 = vrot.slane %v609_v47, %v612_v48 }
  0xec   :  { %v124_v62 = vrot.slane %v123_v55, 2 }
  0xed   :  { %156 = vrot.lane.b32.xlu1 %v129_v46, %s795_s29  ;;  %v133_v63 = vrot.slane %v132_v59, 2  ;;  %v543_v46 = vrot.slane %v254_v26, %v542_v44  ;;  %v621_v59 = vsub.s32 3, %v861_v20 }
  0xef   :  { %99 = vrot.lane.b32.xlu0 %v98_v54, %s795_s29  ;;  %v622_v60 = vrot.slane %v609_v47, %v621_v59 }
  0xf1   :  { %109 = vrot.lane.b32.xlu1 %v108_v58, %s795_s29 }
  0xf3   :  { %125 = vrot.lane.b32.xlu0 %v124_v62, %s795_s29 }
  0xf5   :  { %134 = vrot.lane.b32.xlu1 %v133_v63, %s795_s29 }
 0x159   :  { %v139_v2 = vpop.permute.xlu0 %138 }
 0x15a   :  { %141 = vst.msk [vmem:[#allocation2 + $0x1] sm:$0x1] %vm87_vm3, %v139_v2 }
 0x15b   :  { %143 = vst.msk [vmem:[#allocation2 + $0x1] sm:$0x1] %vm102_vm4, %v98_v54  ;;  %v151_v3 = vpop.permute.xlu1 %150 }
 0x15c   :  { %153 = vst.msk [vmem:[#allocation2 + $0x5] sm:$0x1] %vm87_vm3, %v151_v3 }
 0x15d   :  { %155 = vst.msk [vmem:[#allocation2 + $0x5] sm:$0x1] %vm102_vm4, %v124_v62  ;;  %v145_v4 = vpop.permute.xlu0 %144 }
 0x15e   :  { %147 = vst.msk [vmem:[#allocation2 + $0x3] sm:$0x1] %vm87_vm3, %v145_v4 }
 0x15f   :  { %149 = vst.msk [vmem:[#allocation2 + $0x3] sm:$0x1] %vm102_vm4, %v108_v58  ;;  %v157_v5 = vpop.permute.xlu1 %156  ;;  %v796_v58 = vmov 0  }
 0x160   :  { %159 = vst.msk [vmem:[#allocation2 + $0x7] sm:$0x1] %vm87_vm3, %v157_v5  ;;  %751 = vset.pattern.permute.xlu1 %v796_v58  ;;  %752 = vset.pattern.permute.xlu0 %v796_v58 }
 0x161   :  { %161 = vst.msk [vmem:[#allocation2 + $0x7] sm:$0x1] %vm102_vm4, %v133_v63  ;;  %v100_v6 = vpop.permute.xlu0 %99 }
 0x162   :  { %103 = vst.msk [vmem:[#allocation2] sm:$0x1] %vm102_vm4, %v100_v6 }
 0x163   :  { %v110_v7 = vpop.permute.xlu1 %109 }
 0x164   :  { %112 = vst.msk [vmem:[#allocation2 + $0x2] sm:$0x1] %vm102_vm4, %v110_v7 }
 0x165   :  { %v126_v8 = vpop.permute.xlu0 %125 }
 0x166   :  { %128 = vst.msk [vmem:[#allocation2 + $0x4] sm:$0x1] %vm102_vm4, %v126_v8 }
 0x167   :  { %v135_v9 = vpop.permute.xlu1 %134 }
 0x168   :  { %137 = vst.msk [vmem:[#allocation2 + $0x6] sm:$0x1] %vm102_vm4, %v135_v9 }
 0x16f   :  { %v162_v10 = vld [vmem:[#allocation2] sm:$0xff] }
 0x170   :  { %v164_v11 = vcombine.high %v162_v10, %v162_v10  ;;  %v171_v12 = vrot.slane %v162_v10, %v876_v28 }
 0x172   :  { %v179_v13 = vcombine.high %v171_v12, %v171_v12  ;;  %v178_v14 = vrot.slane %v164_v11, %v876_v28  ;;  %v185_v17 = vpack.c.bf16 %v171_v12, %v171_v12 }
 0x174   :  { %v186_v15 = vpack.c.bf16 %v179_v13, %v179_v13  ;;  %v180_v16 = vcombine.high %v178_v14, %v178_v14  ;;  %v187_v19 = vpack.c.bf16 %v178_v14, %v178_v14 }
 0x176   :  { %483 = vmatprep.mubr.bf16.mxu1 %v186_v15  ;;  %v188_v18 = vpack.c.bf16 %v180_v16, %v180_v16 }
 0x177   :  { %484 = vmatmul.mubr.bf16.vlgmr.msra.gmra.mrb[0].mxu1 %v185_v17 }
 0x178   :  { %523 = vmatprep.mubr.bf16.mxu0 %v188_v18  ;;  %742 = vmatprep.mubr.msk.bf16.mxu1 %vm793_vm0, %v792_v0 }
 0x179   :  { %524 = vmatmul.mubr.bf16.vlgmr.msra.gmra.mrb[4].mxu0 %v187_v19  ;;  %737 = vmatpush3.bf16.msra.mxu1 %v789_v21 }
 0x17a   :  { %738 = vmatprep.subr.bf16.mxu1 %v792_v0 }
 0x17d   :  { %739 = vmatpush3.bf16.msra.mxu1 %v790_v22 }
 0x17e   :  { %740 = vmatprep.subr.bf16.mxu1 %v792_v0 }
 0x181   :  { %741 = vmatpush3.bf16.msra.mxu1 %v565_v24 }
 0x24a   :  { %v694_v28 = vpop.f32.mrb[0].mxu1 }
 0x24b   :  { %v695_v30 = vpop.f32.mrb[1].mxu1 }
 0x24c   :  { %v696_v31 = vadd.f32 %v695_v30, %v694_v28  ;;  %v697_v32 = vpop.f32.mrb[2].mxu1  ;;  %v716_v0 = vpop.f32.mrb[4].mxu0 }
 0x24d   :  { %v698_v33 = vpop.f32.mrb[3].mxu1  ;;  %v717_v34 = vpop.f32.mrb[5].mxu0 }
 0x24e   :  { %v486_v35 = vadd.f32 %v696_v31, %v258_v29  ;;  %v718_v36 = vadd.f32 %v717_v34, %v716_v0  ;;  %v719_v37 = vpop.f32.mrb[6].mxu0 }
 0x24f   :  { %v720_v38 = vpop.f32.mrb[7].mxu0 }
 0x250   :  { %v526_v39 = vadd.f32 %v718_v36, %v486_v35 }
 0x252   :  { %v531_v41 = vmax.f32 %v526_v39, 0.0 }
 0x254   :  { %v533_v42 = vadd.f32 %v532_v40, %v531_v41 }
 0x256   :  { %v539_v43 = vpack.c.bf16 %v533_v42, %v533_v42 }
 0x258   :  { %743 = vmatmul.mubr.msk.bf16.vlgmr.msra.gmra.mrb[4].mxu1 %vm559_vm6, %v539_v43 }
 0x32b   :  { %v601_v49 = vpop.f32.mrb[4].mxu1 }
 0x32c   :  { %v602_v50 = vadd.f32 %v601_v49, %v543_v46  ;;  %v744_v51 = vpop.f32.mrb[5].mxu1 }
 0x32d   :  { %v604_v53 = vpop.f32.mrb[6].mxu1 }
 0x32e   :  { %v607_v54 = vmax.f32 %v602_v50, 0.0  ;;  %v745_v55 = vpop.f32.mrb[7].mxu1 }
 0x330   :  { %v614_v56 = vmul.f32 %v613_v52, %v607_v54 }
 0x332   :  { %v616_v57 = vsel %vm615_vm7, %v614_v56, 0.0 }
 0x333   :  { %617 = vadd.xlane.f32.xlu0 %v616_v57 }
 0x3c0   :  { %v618_v61 = vpop.xlane.xlu0 %617 }
 0x3c1   :  { %v623_v62 = vadd.f32 %v622_v60, %v618_v61 }
 0x3c3   :  { %626 = vperm.xlu1 %751, %v623_v62  }
 0x442   :  { %v627_v63 = vpop.permute.xlu1 %626 }
 0x443   :  { %629 = vst [vmem:[%s999_s3] sm:$0x3] %v627_v63 }

</bundles_post_ra>
